<compile_context>
chip_gen: v5e
topology: v5e:2x2
jax: 0.10.0
libtpu: 0.0.40
codegen_flags: <defaults>
</compile_context>

<pallas_src>
import jax
import jax.numpy as jnp
from jax.experimental import pallas as pl
from jax.experimental.pallas import tpu as pltpu


# ---------------------------------------------------------------------------
# Kernel 1: fused QKV projection  (x @ [Wq*scale | Wk | Wv]) -> bf16 q, k, v
# ---------------------------------------------------------------------------
def _qkv_proj_kernel(x_ref, w_ref, q_ref, k_ref, v_ref):
    # x_ref: (tm, d_in), w_ref: (d_in, 3*d_out); q/k/v_ref: (tm, d_out) bf16
    d = q_ref.shape[-1]
    qkv = jnp.dot(x_ref[...], w_ref[...], preferred_element_type=jnp.float32)
    q_ref[...] = qkv[:, :d].astype(q_ref.dtype)
    k_ref[...] = qkv[:, d:2 * d].astype(k_ref.dtype)
    v_ref[...] = qkv[:, 2 * d:].astype(v_ref.dtype)


# ---------------------------------------------------------------------------
# Kernel 2: flash attention with in-kernel causal mask + online softmax
# ---------------------------------------------------------------------------
def _flash_attn_kernel(q_ref, k_ref, v_ref, o_ref, m_sc, l_sc, acc_sc):
    qi = pl.program_id(1)
    ki = pl.program_id(2)
    tq = q_ref.shape[0]
    tk = k_ref.shape[0]
    q_start = qi * tq
    k_start = ki * tk

    @pl.when(ki == 0)
    def _init():
        m_sc[...] = jnp.full_like(m_sc, -jnp.inf)
        l_sc[...] = jnp.zeros_like(l_sc)
        acc_sc[...] = jnp.zeros_like(acc_sc)

    def _scores():
        # QK^T without an explicit transpose: contract the feature dims.
        # bf16 operands, f32 accumulation.
        return jax.lax.dot_general(
            q_ref[...], k_ref[...], (((1,), (1,)), ((), ())),
            preferred_element_type=jnp.float32)               # (tq, tk) f32

    def _online_update(s):
        # Softmax elementwise math in f32 (no bf16 VPU on v5e).
        m_prev = m_sc[...]
        m_new = jnp.maximum(m_prev, jnp.max(s, axis=-1, keepdims=True))
        alpha = jnp.exp(m_prev - m_new)
        p = jnp.exp(s - m_new)                                 # (tq, tk) f32
        l_sc[...] = alpha * l_sc[...] + jnp.sum(p, axis=-1, keepdims=True)
        acc_sc[...] = alpha * acc_sc[...] + jnp.dot(
            p.astype(jnp.bfloat16), v_ref[...],
            preferred_element_type=jnp.float32)
        m_sc[...] = m_new

    # Tile intersects the causal (lower-triangular) region at all.
    in_causal = q_start + (tq - 1) >= k_start
    # Tile crosses the diagonal -> needs per-element masking.
    crosses_diag = q_start < k_start + (tk - 1)

    @pl.when(jnp.logical_and(in_causal, jnp.logical_not(crosses_diag)))
    def _compute_unmasked():
        _online_update(_scores())

    @pl.when(jnp.logical_and(in_causal, crosses_diag))
    def _compute_masked():
        s = _scores()
        row = jax.lax.broadcasted_iota(jnp.int32, (tq, tk), 0) + q_start
        col = jax.lax.broadcasted_iota(jnp.int32, (tq, tk), 1) + k_start
        # Large finite negative (not -inf) so fully-masked rows can never NaN
        # if this kernel is reused with padded/jagged sequences.
        _online_update(jnp.where(row >= col, s, jnp.float32(-1e30)))

    # Finalize right after the last kv tile that intersects the causal region
    # (pairs with the DMA clamp in the k/v index_maps: later steps are dead).
    last_ki = (q_start + tq - 1) // tk

    @pl.when(ki == last_ki)
    def _finalize():
        # Dropout (eval mode) on the attention weights -> identity.
        inv_l = pl.reciprocal(l_sc[...], approx=True)
        o_ref[...] = (acc_sc[...] * inv_l).astype(o_ref.dtype)


# ---------------------------------------------------------------------------
# Wrappers
# ---------------------------------------------------------------------------
def fuse_qkv_weights(wq, wk, wv):
    """Fold the 1/sqrt(d_out) softmax scale into Wq and fuse [Wq|Wk|Wv].

    Call once (e.g. at parameter-load time), not per forward."""
    d_out = wq.shape[1]
    scale = 1.0 / jnp.sqrt(jnp.float32(d_out))
    return jnp.concatenate([wq * scale, wk, wv], axis=1)       # (d_in, 3*d_out)


def causal_self_attention(x, w_qkv, *, block_q=128, block_kv=128):
    """x: (B, T, d_in); w_qkv: (d_in, 3*d_out) from fuse_qkv_weights."""
    B, T, d_in = x.shape
    assert w_qkv.shape[0] == d_in and w_qkv.shape[1] % 3 == 0
    d_out = w_qkv.shape[1] // 3

    # ---- fused QKV projection (bf16 outputs, f32 accumulation) ------------
    tm = min(max(block_q, 128), T)
    assert T % tm == 0, "T must be divisible by the row tile"
    row_spec_in = pl.BlockSpec((pl.Squeezed(), tm, d_in), lambda b, i: (b, i, 0))
    row_spec_out = pl.BlockSpec((pl.Squeezed(), tm, d_out), lambda b, i: (b, i, 0))
    qkv_shape = jax.ShapeDtypeStruct((B, T, d_out), jnp.bfloat16)
    q, k, v = pl.pallas_call(
        _qkv_proj_kernel,
        out_shape=(qkv_shape, qkv_shape, qkv_shape),
        grid_spec=pltpu.PrefetchScalarGridSpec(
            num_scalar_prefetch=0,
            grid=(B, T // tm),
            in_specs=[row_spec_in,
                      pl.BlockSpec((d_in, 3 * d_out), lambda b, i: (0, 0))],
            out_specs=(row_spec_out, row_spec_out, row_spec_out),
        ),
        compiler_params=pltpu.CompilerParams(
            dimension_semantics=("parallel", "parallel")),
    )(x, w_qkv)

    # ---- flash attention ---------------------------------------------------
    tq = min(block_q, T)
    tk = min(block_kv, T)
    assert T % tq == 0 and T % tk == 0, "T must be divisible by the q/kv tiles"

    # Causal DMA clamp: for kv tiles entirely above the diagonal, repeat the
    # last useful block index so Pallas skips the re-fetch.
    def kv_index_map(b, qi, ki):
        last_useful = ((qi + 1) * tq - 1) // tk
        return (b, jnp.minimum(ki, last_useful), 0)

    out = pl.pallas_call(
        _flash_attn_kernel,
        out_shape=jax.ShapeDtypeStruct((B, T, d_out), x.dtype),
        grid_spec=pltpu.PrefetchScalarGridSpec(
            num_scalar_prefetch=0,
            grid=(B, T // tq, T // tk),
            in_specs=[
                pl.BlockSpec((pl.Squeezed(), tq, d_out), lambda b, qi, ki: (b, qi, 0)),
                pl.BlockSpec((pl.Squeezed(), tk, d_out), kv_index_map),
                pl.BlockSpec((pl.Squeezed(), tk, d_out), kv_index_map),
            ],
            out_specs=pl.BlockSpec((pl.Squeezed(), tq, d_out),
                                   lambda b, qi, ki: (b, qi, 0)),
            scratch_shapes=[
                pltpu.VMEM((tq, 1), jnp.float32),       # running max m
                pltpu.VMEM((tq, 1), jnp.float32),       # running denom l
                pltpu.VMEM((tq, d_out), jnp.float32),   # output accumulator
            ],
        ),
        compiler_params=pltpu.CompilerParams(
            dimension_semantics=("parallel", "parallel", "arbitrary")),
    )(q, k, v)
    return out


# ---------------------------------------------------------------------------
# Pure-JAX reference mirroring the PyTorch forward (eval mode, f32)
# ---------------------------------------------------------------------------
def _reference(x, wq, wk, wv):
    q = x @ wq
    k = x @ wk
    v = x @ wv
    T = x.shape[1]
    mask = jnp.triu(jnp.ones((T, T), dtype=bool), k=1)
    scores = jnp.einsum("btd,bsd->bts", q, k)
    scores = jnp.where(mask[None], -jnp.inf, scores)
    w = jax.nn.softmax(scores / jnp.sqrt(jnp.float32(k.shape[-1])), axis=-1)
    return w @ v


if __name__ == "__main__":
    # Small, module-consistent shapes (lane-dense d_out).  T=256 with 128-tiles
    # exercises the multi-tile kv loop, the cross-tile causal mask, the
    # unmasked fast path (qi>ki) and the DMA-clamped skipped tiles (qi<ki).
    B, T, d_in, d_out = 2, 256, 64, 128
    dropout_prob = 0.1  # unused in eval mode

    key = jax.random.PRNGKey(0)
    kx, kq, kk, kv = jax.random.split(key, 4)

    x = jax.random.normal(kx, (B, T, d_in), dtype=jnp.float32)
    # nn.Linear(d_in, d_out, bias=False): weight is (d_out, d_in), y = x @ W.T.
    # We store the transposed weight (d_in, d_out) directly.
    wscale = 1.0 / jnp.sqrt(jnp.float32(d_in))
    wq = (jax.random.uniform(kq, (d_in, d_out), dtype=jnp.float32) * 2 - 1) * wscale
    wk = (jax.random.uniform(kk, (d_in, d_out), dtype=jnp.float32) * 2 - 1) * wscale
    wv = (jax.random.uniform(kv, (d_in, d_out), dtype=jnp.float32) * 2 - 1) * wscale

    w_qkv = fuse_qkv_weights(wq, wk, wv)   # built once, reused across forwards
    out = causal_self_attention(x, w_qkv, block_q=128, block_kv=128)
    out = jax.block_until_ready(out)

    ref = _reference(x, wq, wk, wv)
    assert out.shape == (B, T, d_out)
    # bf16 q/k/v + bf16 p (f32 accumulation) + online softmax + approx
    # reciprocal => tolerance calibrated to bf16 operands, not exact f32.
    assert jnp.allclose(out, ref, atol=5e-2, rtol=5e-2), (
        "mismatch vs reference: max abs err = "
        f"{float(jnp.max(jnp.abs(out - ref)))}")

    print("KERNEL_OK")
</pallas_src>

<mosaic_0001>
module attributes {stable_mosaic.version = 11 : i64} {
  func.func @_qkv_proj_kernel(%arg0: i32, %arg1: i32, %arg2: memref<1x128x64xf32, #tpu.memory_space<vmem>>, %arg3: memref<64x384xf32, #tpu.memory_space<vmem>>, %arg4: memref<1x128x128xbf16, #tpu.memory_space<vmem>>, %arg5: memref<1x128x128xbf16, #tpu.memory_space<vmem>>, %arg6: memref<1x128x128xbf16, #tpu.memory_space<vmem>>) attributes {dimension_semantics = [#tpu.dimension_semantics<parallel>, #tpu.dimension_semantics<parallel>], iteration_bounds = array<i64: 2, 2>, scalar_prefetch = 0 : i64, scratch_operands = 0 : i64, tpu.core_type = #tpu.core_type<tc>, window_params = [{transform_indices = @transform_0, window_bounds = array<i64: 1, 128, 64>}, {pipeline_mode = #tpu.pipeline_mode<synchronous>, transform_indices = @transform_1, window_bounds = array<i64: 64, 384>}, {transform_indices = @transform_2, window_bounds = array<i64: 1, 128, 128>}, {transform_indices = @transform_3, window_bounds = array<i64: 1, 128, 128>}, {transform_indices = @transform_4, window_bounds = array<i64: 1, 128, 128>}]} {
    %c0 = arith.constant 0 : index
    %c0_0 = arith.constant 0 : index
    %c0_1 = arith.constant 0 : index
    %0 = vector.load %arg2[%c0, %c0_0, %c0_1] : memref<1x128x64xf32, #tpu.memory_space<vmem>>, vector<1x128x64xf32>
    %1 = vector.shape_cast %0 : vector<1x128x64xf32> to vector<128x64xf32>
    %c0_2 = arith.constant 0 : index
    %c0_3 = arith.constant 0 : index
    %2 = vector.load %arg3[%c0_2, %c0_3] : memref<64x384xf32, #tpu.memory_space<vmem>>, vector<64x384xf32>
    %cst = arith.constant dense<0.000000e+00> : vector<128x384xf32>
    %3 = tpu.matmul %1, %2, %cst {dimension_numbers = #tpu.dot_dimension_numbers<[1], [0], [0], [1], [0, 0, 1, 1], [], []>} : vector<128x64xf32>, vector<64x384xf32>, vector<128x384xf32> -> vector<128x384xf32>
    %4 = vector.extract_strided_slice %3 {offsets = [0, 0], sizes = [128, 128], strides = [1, 1]} : vector<128x384xf32> to vector<128x128xf32>
    %5 = arith.truncf %4 : vector<128x128xf32> to vector<128x128xbf16>
    %c0_4 = arith.constant 0 : index
    %c0_5 = arith.constant 0 : index
    %c0_6 = arith.constant 0 : index
    %6 = vector.load %arg4[%c0_4, %c0_5, %c0_6] : memref<1x128x128xbf16, #tpu.memory_space<vmem>>, vector<1x128x128xbf16>
    %7 = vector.shape_cast %6 : vector<1x128x128xbf16> to vector<128x128xbf16>
    %8 = vector.shape_cast %5 : vector<128x128xbf16> to vector<1x128x128xbf16>
    tpu.vector_store %arg4[%c0_4, %c0_5, %c0_6], %8 {strides = array<i32>} : memref<1x128x128xbf16, #tpu.memory_space<vmem>>, vector<1x128x128xbf16>,
    %9 = vector.extract_strided_slice %3 {offsets = [0, 128], sizes = [128, 128], strides = [1, 1]} : vector<128x384xf32> to vector<128x128xf32>
    %10 = arith.truncf %9 : vector<128x128xf32> to vector<128x128xbf16>
    %c0_7 = arith.constant 0 : index
    %c0_8 = arith.constant 0 : index
    %c0_9 = arith.constant 0 : index
    %11 = vector.load %arg5[%c0_7, %c0_8, %c0_9] : memref<1x128x128xbf16, #tpu.memory_space<vmem>>, vector<1x128x128xbf16>
    %12 = vector.shape_cast %11 : vector<1x128x128xbf16> to vector<128x128xbf16>
    %13 = vector.shape_cast %10 : vector<128x128xbf16> to vector<1x128x128xbf16>
    tpu.vector_store %arg5[%c0_7, %c0_8, %c0_9], %13 {strides = array<i32>} : memref<1x128x128xbf16, #tpu.memory_space<vmem>>, vector<1x128x128xbf16>,
    %14 = vector.extract_strided_slice %3 {offsets = [0, 256], sizes = [128, 128], strides = [1, 1]} : vector<128x384xf32> to vector<128x128xf32>
    %15 = arith.truncf %14 : vector<128x128xf32> to vector<128x128xbf16>
    %c0_10 = arith.constant 0 : index
    %c0_11 = arith.constant 0 : index
    %c0_12 = arith.constant 0 : index
    %16 = vector.load %arg6[%c0_10, %c0_11, %c0_12] : memref<1x128x128xbf16, #tpu.memory_space<vmem>>, vector<1x128x128xbf16>
    %17 = vector.shape_cast %16 : vector<1x128x128xbf16> to vector<128x128xbf16>
    %18 = vector.shape_cast %15 : vector<128x128xbf16> to vector<1x128x128xbf16>
    tpu.vector_store %arg6[%c0_10, %c0_11, %c0_12], %18 {strides = array<i32>} : memref<1x128x128xbf16, #tpu.memory_space<vmem>>, vector<1x128x128xbf16>,
    return
  }
  func.func @transform_0(%arg0: i32, %arg1: i32) -> (i32, i32, i32) {
    %c0_i32 = arith.constant 0 : i32
    %c0_i32_0 = arith.constant 0 : i32
    return %arg0, %arg1, %c0_i32 : i32, i32, i32
  }
  func.func @transform_1(%arg0: i32, %arg1: i32) -> (i32, i32) {
    %c0_i32 = arith.constant 0 : i32
    %c0_i32_0 = arith.constant 0 : i32
    %c0_i32_1 = arith.constant 0 : i32
    return %c0_i32, %c0_i32_0 : i32, i32
  }
  func.func @transform_2(%arg0: i32, %arg1: i32) -> (i32, i32, i32) {
    %c0_i32 = arith.constant 0 : i32
    %c0_i32_0 = arith.constant 0 : i32
    return %arg0, %arg1, %c0_i32 : i32, i32, i32
  }
  func.func @transform_3(%arg0: i32, %arg1: i32) -> (i32, i32, i32) {
    %c0_i32 = arith.constant 0 : i32
    %c0_i32_0 = arith.constant 0 : i32
    return %arg0, %arg1, %c0_i32 : i32, i32, i32
  }
  func.func @transform_4(%arg0: i32, %arg1: i32) -> (i32, i32, i32) {
    %c0_i32 = arith.constant 0 : i32
    %c0_i32_0 = arith.constant 0 : i32
    return %arg0, %arg1, %c0_i32 : i32, i32, i32
  }
}

</mosaic_0001>

<bundles_post_ra>
// kernel: tpu_custom_call.1
= control target key start
LH: loop header
LB: loop body
LE: loop exit
PB: predicated region body
PF: predicated region fallthrough
CT: control target
= control target key end

     0   :  { %s1753_s0 = inlined_call_operand.vmem [shape: f32[2,256,64], index: 0, kind: input, shape index: {}]   ;;  %s1754_s1 = inlined_call_operand.vmem [shape: f32[64,384], index: 1, kind: input, shape index: {}]   ;;  %s1755_s2 = inlined_call_operand.hbm [shape: bf16[2,256,128], index: 2, kind: output, shape index: {0}]   ;;  %s1756_s3 = inlined_call_operand.hbm [shape: bf16[2,256,128], index: 3, kind: output, shape index: {1}]   ;;  %s1757_s4 = inlined_call_operand.hbm [shape: bf16[2,256,128], index: 4, kind: output, shape index: {2}]  }
   0x1   :  { %1761 = sst [smem:[#allocation10_spill]] %s1753_s0 }
   0x2   :  { %1762 = sst [smem:[#allocation11_spill]] %s1754_s1 }
   0x3   :  { %1763 = sst [smem:[#allocation12_spill]] %s1756_s3 }
   0x4   :  { %10 = vsyncpa [#allocation3], 0 }
   0x5   :  { %12 = vsyncpa [#allocation3 + $0x1], 0 }
   0x6   :  { %13 = vsyncpa [#allocation5], 0 }
   0x7   :  { %15 = vsyncpa [#allocation5 + $0x1], 0  ;;  %s1352_s15 = smov 0   ;;  %s1354_s16 = smov 0  }
   0x8   :  { %s1356_s17 = smov 0   ;;  %s1358_s18 = smov 0  }
   0x9   :  { %s1360_s19 = smov 0   ;;  %s1362_s20 = smov 0  }
   0xa   :  { %s1364_s21 = smov 0   ;;  %s1366_s22 = smov 0  }
   0xb LB: > { %s848_s23 = sadd.s32 4294967295, %s1323_s22   ;;  %s1758_s24 = sadd.s32 4294967294, %s1323_s22   ;;  %s1323_s22 = sphi %s1366_s22, %s21_s22   ;;  %s1319_s21 = sphi %s1364_s21, %s1780_s21   ;;  %s1315_s20 = sphi %s1362_s20, %s1779_s20   ;;  %s1311_s19 = sphi %s1360_s19, %s1778_s19   ;;  %s1307_s18 = sphi %s1358_s18, %s1777_s18   ;;  %s1303_s17 = sphi %s1356_s17, %s1776_s17   ;;  %s1299_s16 = sphi %s1354_s16, %s1775_s16   ;;  %s1295_s15 = sphi %s1352_s15, %s1774_s15  }
   0xc   : > { %s30_s25 = sadd.s32 1, %s1315_s20  ;;  %s33_s26 = sadd.s32 1, %s1319_s21 }
   0xd   : > { %p31_p0 = scmp.ge.s32.totalorder %s30_s25, 2  ;;  %p101_p1 = scmp.ne.s32.totalorder %s1303_s17, %s1299_s16 }
   0xe   : > { %p102_p2 = scmp.eq.s32.totalorder %s848_s23, 3  ;;  %p107_p5 = scmp.ne.s32.totalorder %s1299_s16, %s1295_s15 }
   0xf   : > { %s1782_s25 = smov (%p31_p0, %s30_s25), 0  ;;  %s1784_s26 = smov (!%p31_p0, %s33_s26), %s1319_s21 }
  0x10   : > { %s87_s27 = ssub.s32 %s1315_s20, %s1782_s25  ;;  %p1405_p3 = por %p102_p2, %p101_p1 }
  0x11   : > { %p35_p4 = scmp.ge.s32.totalorder %s1784_s26, 2  ;;  %p108_p6 = scmp.eq.s32.totalorder %s1758_s24, 3 }
  0x12   : > { %p852_p7 = scmp.ge.s32.totalorder %s1323_s22, 1  ;;  %p198_p9 = scmp.lt.s32.totalorder %s1323_s22, 5 }
  0x13   : > { %s1786_s26 = smov (%p35_p4, %s1784_s26), 0  ;;  %p1416_p8 = por %p108_p6, %p107_p5 }
  0x14   : > { %1765 = sst [smem:[#allocation9_spill]] %s1786_s26  ;;  %s86_s30 = ssub.s32 %s1319_s21, %s1786_s26 }
  0x15   : > { %s91_s5 = sadd.s32 1, %s1303_s17  ;;  %s88_s6 = sor.u32 %s87_s27, %s86_s30 }
  0x16   : > { %p199_p10 = pnand %p852_p7, %p198_p9  ;;  %p89_p11 = scmp.eq.s32.totalorder %s88_s6, 0 }
  0x17   : > { %s1767_s1 = sld [smem:[#allocation11_spill]] (!%p199_p10)  ;;  %s1441_s14 = sshll.u32 (!%p199_p10), %s1307_s18, 4 }
  0x18   : > { %s1425_s7 = scalar_select %p89_p11, %s1303_s17, %s91_s5  }
  0x19   : > { %202 = sbr.rel (%p199_p10) target bundleno = 292 (0x124), region = 28  ;;  %p239_p12 = scmp.lt.s32.totalorder (!%p199_p10), %s1311_s19, 1 }
  0x1a   : > { %p241_p13 = scmp.lt.s32.totalorder (!%p199_p10), %s1441_s14, 31  ;;  %s1768_s0 = sld [smem:[#allocation10_spill]] (!%p199_p10) }
  0x1b   : > { %s1769_s3 = sld [smem:[#allocation12_spill]] (!%p199_p10) }
  0x1e   : > { %v288_v0 = vld [vmem:[%s1767_s1 + $0xa8] sm:$0xff]  ;;  %v1433_v1 = vld [vmem:[%s1767_s1 + $0xb0] sm:$0xff]  ;;  %v1438_v2 = vld [vmem:[%s1767_s1 + $0xb8] sm:$0xff]  ;;  %s240_s11 = scalar_select %p239_p12, %s1311_s19, 1  ;;  %vm291_vm0 = vcmask 523264  }
  0x1f   : > { %348 = vmatpush.msra.mxu0 %v288_v0  ;;  %1062 = vmatpush.msra.mxu3 %v288_v0  ;;  %v285_v3 = vld [vmem:[%s1767_s1 + $0x90] sm:$0xff]  ;;  %v1450_v4 = vld [vmem:[%s1767_s1 + $0x98] sm:$0xff]  ;;  %v1455_v5 = vld [vmem:[%s1767_s1 + $0xa0] sm:$0xff]  ;;  %s242_s5 = scalar_select %p241_p13, %s1441_s14, 31 }
  0x20   : > { %413 = vmatpush.msra.mxu1 %v1433_v1  ;;  %478 = vmatpush.msra.mxu2 %v1438_v2  ;;  %v282_v6 = vld [vmem:[%s1767_s1 + $0x78] sm:$0xff]  ;;  %v283_v7 = vld [vmem:[%s1767_s1 + $0x80] sm:$0xff]  ;;  %v1470_v8 = vld [vmem:[%s1767_s1 + $0x88] sm:$0xff]  ;;  %s857_s9 = sshll.u32 %s240_s11, 5  ;;  %s1641_s11 = sand.u32 1, %s848_s23  }
  0x21   : > { %349 = vmatpush.msra.mxu0 %v285_v3  ;;  %1063 = vmatpush.msra.mxu3 %v285_v3  ;;  %v279_v9 = vld [vmem:[%s1767_s1 + $0x60] sm:$0xff]  ;;  %v280_v10 = vld [vmem:[%s1767_s1 + $0x68] sm:$0xff]  ;;  %v1484_v11 = vld [vmem:[%s1767_s1 + $0x70] sm:$0xff]  ;;  %s244_s27 = sadd.s32 %s857_s9, %s242_s5 }
  0x22   : > { %414 = vmatpush.msra.mxu1 %v1450_v4  ;;  %479 = vmatpush.msra.mxu2 %v1455_v5  ;;  %v276_v12 = vld [vmem:[%s1767_s1 + $0x48] sm:$0xff]  ;;  %v277_v13 = vld [vmem:[%s1767_s1 + $0x50] sm:$0xff]  ;;  %v1496_v14 = vld [vmem:[%s1767_s1 + $0x58] sm:$0xff]  ;;  %s858_s24 = sshll.u32 %s244_s27, 3  ;;  %s1189_s27 = scalar_lea.hbm %s1769_s3, 256 }
  0x23   : > { %350 = vmatpush.msra.mxu0 %v282_v6  ;;  %1064 = vmatpush.msra.mxu3 %v282_v6  ;;  %v273_v15 = vld [vmem:[%s1767_s1 + $0x30] sm:$0xff]  ;;  %v274_v16 = vld [vmem:[%s1767_s1 + $0x38] sm:$0xff]  ;;  %v275_v17 = vld [vmem:[%s1767_s1 + $0x40] sm:$0xff]  ;;  %s1521_s12 = scalar_lea.vmem %s1768_s0, %s858_s24  ;;  %s1759_s24 = sand.u32 1, %s1299_s16  }
  0x24   : > { %415 = vmatpush.msra.mxu1 %v283_v7  ;;  %480 = vmatpush.msra.mxu2 %v1470_v8  ;;  %v270_v18 = vld [vmem:[%s1767_s1 + $0x18] sm:$0xff]  ;;  %v271_v19 = vld [vmem:[%s1767_s1 + $0x20] sm:$0xff]  ;;  %v272_v20 = vld [vmem:[%s1767_s1 + $0x28] sm:$0xff]  ;;  %s853_s18 = sshll.u32 %s1759_s24, 6 }
  0x25   : > { %351 = vmatpush.msra.mxu0 %v279_v9  ;;  %1065 = vmatpush.msra.mxu3 %v279_v9  ;;  %v267_v21 = vld [vmem:[%s1767_s1] sm:$0xff]  ;;  %v268_v22 = vld [vmem:[%s1767_s1 + $0x8] sm:$0xff]  ;;  %v269_v23 = vld [vmem:[%s1767_s1 + $0x10] sm:$0xff]  ;;  %s1611_s5 = scalar_lea.vmem [#allocation2], %s853_s18  ;;  %s1614_s9 = scalar_lea.vmem [#allocation4], %s853_s18 }
  0x26   : > { %416 = vmatpush.msra.mxu1 %v280_v10  ;;  %481 = vmatpush.msra.mxu2 %v1484_v11  ;;  %v251_v24 = vld [vmem:[%s1521_s12] sm:$0xff]  ;;  %v252_v26 = vld [vmem:[%s1521_s12 + $0x8] sm:$0xff]  ;;  %v253_v28 = vld [vmem:[%s1521_s12 + $0x10] sm:$0xff]  ;;  %s1618_s10 = scalar_lea.vmem [#allocation6], %s853_s18  ;;  %s656_s23 = sshll.u32 %s1611_s5, 4  ;;  %s1660_s23 = int_to_ptr.vmem [resolvable:$true] %s656_s23 }
  0x27   : > { %352 = vmatpush.msra.mxu0 %v276_v12  ;;  %1066 = vmatpush.msra.mxu3 %v276_v12  ;;  %v1534_v25 = vld [vmem:[%s1521_s12 + $0x60] sm:$0xff]  ;;  %v264_v27 = vld [vmem:[%s1521_s12 + $0x68] sm:$0xff]  ;;  %v265_v29 = vld [vmem:[%s1521_s12 + $0x70] sm:$0xff] }
  0x28   : > { %417 = vmatpush.msra.mxu1 %v277_v13  ;;  %482 = vmatpush.msra.mxu2 %v1496_v14  ;;  %v254_v30 = vld [vmem:[%s1521_s12 + $0x18] sm:$0xff]  ;;  %v255_v32 = vld [vmem:[%s1521_s12 + $0x20] sm:$0xff]  ;;  %v256_v33 = vld [vmem:[%s1521_s12 + $0x28] sm:$0xff] }
  0x29   : > { %353 = vmatpush.msra.mxu0 %v273_v15  ;;  %1067 = vmatpush.msra.mxu3 %v273_v15  ;;  %v266_v31 = vld [vmem:[%s1521_s12 + $0x78] sm:$0xff]  ;;  %v257_v34 = vld [vmem:[%s1521_s12 + $0x30] sm:$0xff]  ;;  %v259_v36 = vld [vmem:[%s1521_s12 + $0x40] sm:$0xff] }
  0x2a   : > { %418 = vmatpush.msra.mxu1 %v274_v16  ;;  %483 = vmatpush.msra.mxu2 %v275_v17  ;;  %v258_v35 = vld [vmem:[%s1521_s12 + $0x38] sm:$0xff]  ;;  %v260_v37 = vld [vmem:[%s1521_s12 + $0x48] sm:$0xff]  ;;  %v261_v38 = vld [vmem:[%s1521_s12 + $0x50] sm:$0xff] }
  0x2b   : > { %354 = vmatpush.msra.mxu0 %v270_v18  ;;  %1068 = vmatpush.msra.mxu3 %v270_v18  ;;  %v262_v39 = vld [vmem:[%s1521_s12 + $0x58] sm:$0xff]  ;;  %s911_s12 = sshll.u32 %s1311_s19, 5 }
  0x2c   : > { %419 = vmatpush.msra.mxu1 %v271_v19  ;;  %484 = vmatpush.msra.mxu2 %v272_v20  ;;  %s653_s13 = sadd.s32 %s911_s12, %s1441_s14  ;;  %s675_s12 = sshll.u32 %s1614_s9, 4  ;;  %s676_s12 = int_to_ptr.vmem [resolvable:$true] %s675_s12 }
  0x2d   : > { %355 = vmatpush.msra.mxu0 %v267_v21  ;;  %1069 = vmatpush.msra.mxu3 %v267_v21  ;;  %s912_s30 = sshll.u32 %s653_s13, 2 }
  0x2e   : > { %420 = vmatpush.msra.mxu1 %v268_v22  ;;  %485 = vmatpush.msra.mxu2 %v269_v23  ;;  %s674_s19 = scalar_lea.hbm %s1769_s3, %s912_s30  ;;  %s655_s14 = scalar_lea.hbm %s1755_s2, %s912_s30 }
  0x2f   : > { %859 = vmatmul.msk.f32.vlgmr.msra.gmra.mxu0 %vm291_vm0, %v251_v24  ;;  %871 = vmatmul.msk.f32.vlgmr.msra.gmra.mxu3 %vm291_vm0, %v1534_v25  ;;  %s1650_s24 = sshll.u32 %s674_s19, 4  ;;  %s1653_s13 = sshll.u32 %s655_s14, 4  ;;  %s678_s24 = int_to_ptr.hbm [resolvable:$true] %s1650_s24  ;;  %s659_s13 = int_to_ptr.hbm [resolvable:$true] %s1653_s13 }
  0x30   : > { %1070 = vmatpush.msrb.mxu3 %v1433_v1  ;;  %875 = vmatmul.msk.f32.vlgmr.msra.gmra.mxu1 %vm291_vm0, %v251_v24  ;;  %s693_s8 = scalar_lea.hbm %s1757_s4, %s912_s30  ;;  %s637_s14 = scalar_lea.sflag [#allocation5], %s1641_s11 }
  0x31   : > { %891 = vmatmul.msk.f32.vlgmr.msra.gmra.mxu2 %vm291_vm0, %v251_v24  ;;  %s1665_s18 = sshll.u32 %s693_s8, 4  ;;  %s1183_s0 = sshra.s32 %s678_s24, 4  ;;  %s1184_s0 = int_to_ptr.hbm [resolvable:$true] %s1183_s0  ;;  %s697_s18 = int_to_ptr.hbm [resolvable:$true] %s1665_s18 }
  0x32   : > { %1071 = vmatpush.msrb.mxu3 %v1450_v4  ;;  %s1185_s1 = scalar_lea.hbm %s1184_s0, 64  ;;  %p1190_p4 = scmp.lt.s32.totalorder %s1184_s0, %s1769_s3 }
  0x33   : > { %p1186_p0 = scmp.ne.s32.totalorder %s1184_s0, %s1185_s1  ;;  %p1191_p5 = scmp.lt.s32.totalorder %s1189_s27, %s1185_s1 }
  0x34   : > { %1072 = vmatpush.msrb.mxu3 %v283_v7 }
  0x35   : > { %p1187_p1 = pnand %p1186_p0, %p1405_p3  ;;  %p1192_p6 = por %p1191_p5, %p1190_p4 }
  0x36   : > { %1073 = vmatpush.msrb.mxu3 %v280_v10 }
  0x37   : > { %860 = vmatmul.msk.f32.gmra.mxu0 %vm291_vm0, %v252_v26  ;;  %872 = vmatmul.msk.f32.gmra.mxu3 %vm291_vm0, %v264_v27  ;;  %p1188_p2 = pneg %p1187_p1 }
  0x38   : > { %876 = vmatmul.msk.f32.gmra.mxu1 %vm291_vm0, %v252_v26  ;;  %1074 = vmatpush.msrb.mxu3 %v277_v13 }
  0x39   : > { %892 = vmatmul.msk.f32.gmra.mxu2 %vm291_vm0, %v252_v26  ;;  %p1193_p7 = pnand %p1192_p6, %p1188_p2 }
  0x3a   : > { %1075 = vmatpush.msrb.mxu3 %v274_v16 }
  0x3c   : > { %1076 = vmatpush.msrb.mxu3 %v271_v19 }
  0x3e   : > { %1077 = vmatpush.msrb.mxu3 %v268_v22 }
  0x3f   : > { %861 = vmatmul.msk.f32.gmra.mxu0 %vm291_vm0, %v253_v28  ;;  %873 = vmatmul.msk.f32.gmra.mxu3 %vm291_vm0, %v265_v29 }
  0x40   : > { %877 = vmatmul.msk.f32.gmra.mxu1 %vm291_vm0, %v253_v28  ;;  %1078 = vmatpush.msra.mxu3 %v1438_v2 }
  0x41   : > { %893 = vmatmul.msk.f32.gmra.mxu2 %vm291_vm0, %v253_v28 }
  0x42   : > { %1079 = vmatpush.msra.mxu3 %v1455_v5 }
  0x44   : > { %1080 = vmatpush.msra.mxu3 %v1470_v8 }
  0x46   : > { %1081 = vmatpush.msra.mxu3 %v1484_v11 }
  0x47   : > { %862 = vmatmul.msk.f32.gmra.mxu0 %vm291_vm0, %v254_v30  ;;  %874 = vmatmul.msk.f32.gmra.mxu3 %vm291_vm0, %v266_v31 }
  0x48   : > { %878 = vmatmul.msk.f32.gmra.mxu1 %vm291_vm0, %v254_v30  ;;  %1082 = vmatpush.msra.mxu3 %v1496_v14 }
  0x49   : > { %894 = vmatmul.msk.f32.gmra.mxu2 %vm291_vm0, %v254_v30 }
  0x4a   : > { %1083 = vmatpush.msra.mxu3 %v275_v17 }
  0x4c   : > { %1084 = vmatpush.msra.mxu3 %v272_v20 }
  0x4e   : > { %1085 = vmatpush.msra.mxu3 %v269_v23 }
  0x4f   : > { %863 = vmatmul.msk.f32.gmra.mxu0 %vm291_vm0, %v255_v32  ;;  %887 = vmatmul.msk.f32.vlgmr.msrb.gmra.mxu3 %vm291_vm0, %v1534_v25 }
  0x50   : > { %879 = vmatmul.msk.f32.gmra.mxu1 %vm291_vm0, %v255_v32 }
  0x51   : > { %895 = vmatmul.msk.f32.gmra.mxu2 %vm291_vm0, %v255_v32 }
  0x57   : > { %864 = vmatmul.msk.f32.gmra.mxu0 %vm291_vm0, %v256_v33  ;;  %888 = vmatmul.msk.f32.gmra.mxu3 %vm291_vm0, %v264_v27 }
  0x58   : > { %880 = vmatmul.msk.f32.gmra.mxu1 %vm291_vm0, %v256_v33 }
  0x59   : > { %896 = vmatmul.msk.f32.gmra.mxu2 %vm291_vm0, %v256_v33 }
  0x5f   : > { %865 = vmatmul.msk.f32.gmra.mxu0 %vm291_vm0, %v257_v34  ;;  %889 = vmatmul.msk.f32.gmra.mxu3 %vm291_vm0, %v265_v29 }
  0x60   : > { %881 = vmatmul.msk.f32.gmra.mxu1 %vm291_vm0, %v257_v34 }
  0x61   : > { %897 = vmatmul.msk.f32.gmra.mxu2 %vm291_vm0, %v257_v34 }
  0x67   : > { %866 = vmatmul.msk.f32.gmra.mxu0 %vm291_vm0, %v258_v35  ;;  %890 = vmatmul.msk.f32.gmra.mxu3 %vm291_vm0, %v266_v31 }
  0x68   : > { %882 = vmatmul.msk.f32.gmra.mxu1 %vm291_vm0, %v258_v35 }
  0x69   : > { %898 = vmatmul.msk.f32.gmra.mxu2 %vm291_vm0, %v258_v35 }
  0x6f   : > { %867 = vmatmul.msk.f32.gmra.mxu0 %vm291_vm0, %v259_v36  ;;  %903 = vmatmul.msk.f32.vlgmr.msra.gmra.mxu3 %vm291_vm0, %v1534_v25 }
  0x70   : > { %883 = vmatmul.msk.f32.gmra.mxu1 %vm291_vm0, %v259_v36 }
  0x71   : > { %899 = vmatmul.msk.f32.gmra.mxu2 %vm291_vm0, %v259_v36 }
  0x77   : > { %868 = vmatmul.msk.f32.gmra.mxu0 %vm291_vm0, %v260_v37  ;;  %904 = vmatmul.msk.f32.gmra.mxu3 %vm291_vm0, %v264_v27 }
  0x78   : > { %884 = vmatmul.msk.f32.gmra.mxu1 %vm291_vm0, %v260_v37 }
  0x79   : > { %900 = vmatmul.msk.f32.gmra.mxu2 %vm291_vm0, %v260_v37 }
  0x7f   : > { %869 = vmatmul.msk.f32.gmra.mxu0 %vm291_vm0, %v261_v38  ;;  %905 = vmatmul.msk.f32.gmra.mxu3 %vm291_vm0, %v265_v29 }
  0x80   : > { %885 = vmatmul.msk.f32.gmra.mxu1 %vm291_vm0, %v261_v38 }
  0x81   : > { %901 = vmatmul.msk.f32.gmra.mxu2 %vm291_vm0, %v261_v38 }
  0x87   : > { %870 = vmatmul.msk.f32.gmra.mxu0 %vm291_vm0, %v262_v39  ;;  %906 = vmatmul.msk.f32.gmra.mxu3 %vm291_vm0, %v266_v31 }
  0x88   : > { %886 = vmatmul.msk.f32.gmra.mxu1 %vm291_vm0, %v262_v39 }
  0x89   : > { %902 = vmatmul.msk.f32.gmra.mxu2 %vm291_vm0, %v262_v39 }
  0xac   : > { %v357_v40 = vpop.f32.mrf.mxu0 }
  0xad   : > { %v422_v41 = vpop.f32.mrf.mxu1 }
  0xb2   : > { %v393_v42 = vpop.f32.mrf.mxu3 }
  0xb4   : > { %v487_v43 = vpop.f32.mrf.mxu2  ;;  %v360_v44 = vpop.f32.mrf.mxu0 }
  0xb5   : > { %v924_v45 = vpack.c.bf16 %v360_v44, %v357_v40  ;;  %v425_v46 = vpop.f32.mrf.mxu1 }
  0xb6   : > { %v964_v47 = vpack.c.bf16 %v425_v46, %v422_v41 }
  0xb7   : > { %925 = vst [vmem:[%s1611_s5] sm:$0xff] %v924_v45  }
  0xb8   : > { %965 = vst [vmem:[%s1614_s9] sm:$0xff] %v964_v47  }
  0xba   : > { %v396_v48 = vpop.f32.mrf.mxu3 }
  0xbb   : > { %v954_v49 = vpack.c.bf16 %v396_v48, %v393_v42 }
  0xbc   : > { %v490_v50 = vpop.f32.mrf.mxu2  ;;  %v363_v51 = vpop.f32.mrf.mxu0 }
  0xbd   : > { %1046 = vst [vmem:[%s1611_s5 + $0x30] sm:$0xff] %v954_v49   ;;  %v1004_v52 = vpack.c.bf16 %v490_v50, %v487_v43  ;;  %v428_v53 = vpop.f32.mrf.mxu1 }
  0xbf   : > { %1005 = vst [vmem:[%s1618_s10] sm:$0xff] %v1004_v52  }
  0xc2   : > { %v399_v54 = vpop.f32.mrf.mxu3 }
  0xc4   : > { %v493_v55 = vpop.f32.mrf.mxu2  ;;  %v366_v56 = vpop.f32.mrf.mxu0 }
  0xc5   : > { %v929_v57 = vpack.c.bf16 %v366_v56, %v363_v51  ;;  %v431_v58 = vpop.f32.mrf.mxu1 }
  0xc6   : > { %v969_v59 = vpack.c.bf16 %v431_v58, %v428_v53 }
  0xc7   : > { %1041 = vst [vmem:[%s1611_s5 + $0x8] sm:$0xff] %v929_v57  }
  0xc8   : > { %1048 = vst [vmem:[%s1614_s9 + $0x8] sm:$0xff] %v969_v59  }
  0xca   : > { %v402_v60 = vpop.f32.mrf.mxu3 }
  0xcb   : > { %v959_v61 = vpack.c.bf16 %v402_v60, %v399_v54 }
  0xcc   : > { %v496_v62 = vpop.f32.mrf.mxu2  ;;  %v369_v63 = vpop.f32.mrf.mxu0 }
  0xcd   : > { %1047 = vst [vmem:[%s1611_s5 + $0x38] sm:$0xff] %v959_v61   ;;  %v1009_v0 = vpack.c.bf16 %v496_v62, %v493_v55  ;;  %v434_v1 = vpop.f32.mrf.mxu1 }
  0xcf   : > { %1055 = vst [vmem:[%s1618_s10 + $0x8] sm:$0xff] %v1009_v0  }
  0xd2   : > { %v458_v2 = vpop.f32.mrf.mxu3 }
  0xd4   : > { %v499_v3 = vpop.f32.mrf.mxu2  ;;  %v372_v4 = vpop.f32.mrf.mxu0 }
  0xd5   : > { %v934_v5 = vpack.c.bf16 %v372_v4, %v369_v63  ;;  %v437_v6 = vpop.f32.mrf.mxu1 }
  0xd6   : > { %v974_v7 = vpack.c.bf16 %v437_v6, %v434_v1 }
  0xd7   : > { %1042 = vst [vmem:[%s1611_s5 + $0x10] sm:$0xff] %v934_v5  }
  0xd8   : > { %1049 = vst [vmem:[%s1614_s9 + $0x10] sm:$0xff] %v974_v7  }
  0xda   : > { %v461_v8 = vpop.f32.mrf.mxu3 }
  0xdb   : > { %v994_v9 = vpack.c.bf16 %v461_v8, %v458_v2 }
  0xdc   : > { %v502_v10 = vpop.f32.mrf.mxu2  ;;  %v375_v11 = vpop.f32.mrf.mxu0 }
  0xdd   : > { %1053 = vst [vmem:[%s1614_s9 + $0x30] sm:$0xff] %v994_v9   ;;  %v1014_v12 = vpack.c.bf16 %v502_v10, %v499_v3  ;;  %v440_v13 = vpop.f32.mrf.mxu1 }
  0xdf   : > { %1056 = vst [vmem:[%s1618_s10 + $0x10] sm:$0xff] %v1014_v12  }
  0xe2   : > { %v464_v14 = vpop.f32.mrf.mxu3 }
  0xe4   : > { %v505_v15 = vpop.f32.mrf.mxu2  ;;  %v378_v16 = vpop.f32.mrf.mxu0 }
  0xe5   : > { %v939_v17 = vpack.c.bf16 %v378_v16, %v375_v11  ;;  %v443_v18 = vpop.f32.mrf.mxu1 }
  0xe6   : > { %v979_v19 = vpack.c.bf16 %v443_v18, %v440_v13 }
  0xe7   : > { %1043 = vst [vmem:[%s1611_s5 + $0x18] sm:$0xff] %v939_v17  }
  0xe8   : > { %1050 = vst [vmem:[%s1614_s9 + $0x18] sm:$0xff] %v979_v19  }
  0xea   : > { %v467_v20 = vpop.f32.mrf.mxu3 }
  0xeb   : > { %v999_v21 = vpack.c.bf16 %v467_v20, %v464_v14 }
  0xec   : > { %v508_v22 = vpop.f32.mrf.mxu2  ;;  %v381_v23 = vpop.f32.mrf.mxu0 }
  0xed   : > { %1054 = vst [vmem:[%s1614_s9 + $0x38] sm:$0xff] %v999_v21   ;;  %v1019_v24 = vpack.c.bf16 %v508_v22, %v505_v15  ;;  %v446_v25 = vpop.f32.mrf.mxu1 }
  0xef   : > { %1057 = vst [vmem:[%s1618_s10 + $0x18] sm:$0xff] %v1019_v24  }
  0xf2   : > { %v523_v26 = vpop.f32.mrf.mxu3 }
  0xf4   : > { %v511_v27 = vpop.f32.mrf.mxu2  ;;  %v384_v28 = vpop.f32.mrf.mxu0 }
  0xf5   : > { %v944_v29 = vpack.c.bf16 %v384_v28, %v381_v23  ;;  %v449_v30 = vpop.f32.mrf.mxu1 }
  0xf6   : > { %v984_v31 = vpack.c.bf16 %v449_v30, %v446_v25 }
  0xf7   : > { %1044 = vst [vmem:[%s1611_s5 + $0x20] sm:$0xff] %v944_v29  }
  0xf8   : > { %1051 = vst [vmem:[%s1614_s9 + $0x20] sm:$0xff] %v984_v31  }
  0xfa   : > { %v526_v32 = vpop.f32.mrf.mxu3 }
  0xfb   : > { %v1034_v33 = vpack.c.bf16 %v526_v32, %v523_v26 }
  0xfc   : > { %v514_v34 = vpop.f32.mrf.mxu2  ;;  %v387_v35 = vpop.f32.mrf.mxu0 }
  0xfd   : > { %v1024_v36 = vpack.c.bf16 %v514_v34, %v511_v27  ;;  %1060 = vst [vmem:[%s1618_s10 + $0x30] sm:$0xff] %v1034_v33   ;;  %v452_v37 = vpop.f32.mrf.mxu1 }
  0xff   : > { %1058 = vst [vmem:[%s1618_s10 + $0x20] sm:$0xff] %v1024_v36  }
 0x102   : > { %v529_v38 = vpop.f32.mrf.mxu3 }
 0x104   : > { %v517_v39 = vpop.f32.mrf.mxu2  ;;  %v390_v40 = vpop.f32.mrf.mxu0 }
 0x105   : > { %v949_v41 = vpack.c.bf16 %v390_v40, %v387_v35  ;;  %v455_v42 = vpop.f32.mrf.mxu1 }
 0x106   : > { %v989_v43 = vpack.c.bf16 %v455_v42, %v452_v37 }
 0x107   : > { %1045 = vst [vmem:[%s1611_s5 + $0x28] sm:$0xff] %v949_v41  }
 0x108   : > { %1052 = vst [vmem:[%s1614_s9 + $0x28] sm:$0xff] %v989_v43  }
 0x109   : > { %1196 = shalt.err (!%p1193_p7)
}
 0x10a   : > { %s1325_s9 = smov 64   ;;  %s1326_s8 = smov 4   ;;  %v532_v44 = vpop.f32.mrf.mxu3 }
 0x10b   : > { %1087 = dma.vmem_to_hbm [thread:$0]  (%p1405_p3), %s676_s12, 1024, %s678_s24, %s637_s14, %s1325_s9, %s1325_s9, %s1326_s8  }
 0x10c   : > { %s1770_s26 = sand.u32 1, %s1299_s16   ;;  %s1211_s1 = sshra.s32 %s659_s13, 4  ;;  %s1212_s1 = int_to_ptr.hbm [resolvable:$true] %s1211_s1 }
 0x10d   : > { %s632_s0 = scalar_lea.sflag [#allocation3], %s1770_s26  ;;  %s1213_s30 = scalar_lea.hbm %s1212_s1, 64 }
 0x10e   : > { %p1214_p9 = scmp.ne.s32.totalorder %s1212_s1, %s1213_s30  ;;  %s1217_s5 = scalar_lea.hbm %s1755_s2, 256 }
 0x10f   : > { %p1218_p12 = scmp.lt.s32.totalorder %s1212_s1, %s1755_s2  ;;  %p1219_p13 = scmp.lt.s32.totalorder %s1217_s5, %s1213_s30 }
 0x110   : > { %p1215_p10 = pnand %p1214_p9, %p1405_p3 }
 0x111   : > { %p1220_p0 = por %p1219_p13, %p1218_p12 }
 0x112   : > { %p1216_p11 = pneg %p1215_p10 }
 0x114   : > { %p1221_p1 = pnand %p1220_p0, %p1216_p11 }
 0x116   : > { %1224 = shalt.err (!%p1221_p1)
}
 0x117   : > { %1086 = dma.vmem_to_hbm [thread:$0]  (%p1405_p3), %s1660_s23, 1024, %s659_s13, %s632_s0, %s1325_s9, %s1325_s9, %s1326_s8   ;;  %v1039_v45 = vpack.c.bf16 %v532_v44, %v529_v38  ;;  %v520_v46 = vpop.f32.mrf.mxu2 }
 0x118   : > { %s1771_s3 = sshll.u32 %s1618_s10, 4  ;;  %v1029_v47 = vpack.c.bf16 %v520_v46, %v517_v39  ;;  %s1239_s24 = sshra.s32 %s697_s18, 4  ;;  %s695_s3 = int_to_ptr.vmem [resolvable:$true] %s1771_s3  ;;  %s1240_s24 = int_to_ptr.hbm [resolvable:$true] %s1239_s24 }
 0x119   : > { %1061 = vst [vmem:[%s1618_s10 + $0x38] sm:$0xff] %v1039_v45   ;;  %s1241_s12 = scalar_lea.hbm %s1240_s24, 64  ;;  %s1245_s1 = scalar_lea.hbm %s1757_s4, 256 }
 0x11a   : > { %1059 = vst [vmem:[%s1618_s10 + $0x28] sm:$0xff] %v1029_v47   ;;  %p1242_p2 = scmp.ne.s32.totalorder %s1240_s24, %s1241_s12  ;;  %p1246_p6 = scmp.lt.s32.totalorder %s1240_s24, %s1757_s4 }
 0x11b   : > { %p1247_p7 = scmp.lt.s32.totalorder %s1245_s1, %s1241_s12 }
 0x11c   : > { %p1243_p4 = pnand %p1242_p2, %p1405_p3 }
 0x11d   : > { %p1248_p9 = por %p1247_p7, %p1246_p6 }
 0x11e   : > { %p1244_p5 = pneg %p1243_p4 }
 0x120   : > { %p1249_p10 = pnand %p1248_p9, %p1244_p5 }
 0x122   : > { %1252 = shalt.err (!%p1249_p10)
}
 0x123   : > { %1088 = dma.vmem_to_hbm [thread:$0]  (%p1405_p3), %s695_s3, 1024, %s697_s18, %s637_s14, %s1325_s9, %s1325_s9, %s1326_s8  }
 0x124 PF: > { %p1102_p11 = scmp.ge.s32.totalorder %s1323_s22, 2  ;;  %s711_s10 = sand.u32 1, %s1295_s15  }
 0x125   : > { %s712_s0 = scalar_lea.sflag [#allocation3], %s711_s10 }
 0x126   : > { %p1093_p12 = pnand %p1102_p11, %p1416_p8 }
 0x128   : > { %p1094_p13 = pneg %p1093_p12 }
 0x12a   : > { %1286 = dma.done.wait (%p1094_p13), %s712_s0, 1024  }
 0x12b   : > { %1288 = vsyncadd (%p1094_p13), %s712_s0, 4294966272  ;;  %s1772_s28 = sadd.s32 4294967294, %s1323_s22  }
 0x12c   : > { %s721_s30 = sand.u32 1, %s1772_s28  }
 0x12d   : > { %s722_s6 = scalar_lea.sflag [#allocation5], %s721_s30 }
 0x12e   : > { %1290 = dma.done.wait (%p1094_p13), %s722_s6, 2048  }
 0x12f   : > { %1292 = vsyncadd (%p1094_p13), %s722_s6, 4294965248  ;;  %s21_s22 = sadd.s32 1, %s1323_s22   ;;  %s1773_s29 = sld [smem:[#allocation9_spill]] }
 0x130   : > { %p18_p3 = scmp.ge.s32.totalorder %s21_s22, 6   ;;  %s1774_s15 = smov %s1299_s16 }
 0x131   : > { %s1775_s16 = smov %s1303_s17  ;;  %s1776_s17 = smov %s1425_s7 }
 0x132   : > { %s1777_s18 = smov %s1315_s20  ;;  %s1778_s19 = smov %s1319_s21 }
 0x133   : > { %s1779_s20 = smov %s1782_s25  ;;  %20 = sbr.rel (!%p18_p3) target bundleno = 11 (0xb), region = 95 }
 0x135   : > { %s1780_s21 = smov %s1773_s29 }
 0x138   :  { %738 = vsyncpa [#allocation3], 1 }
 0x139   :  { %740 = vsyncpa [#allocation3 + $0x1], 1 }
 0x13a   :  { %741 = vsyncpa [#allocation5], 1 }
 0x13b   :  { %743 = vsyncpa [#allocation5 + $0x1], 1 }

</bundles_post_ra>
